<compile_context>
chip_gen: v6e
topology: v6e:2x2x1
jax: 0.10.0
libtpu: 0.0.40
codegen_flags: <defaults>
</compile_context>

<pallas_src>
import functools

import jax
import jax.numpy as jnp
from jax.experimental import pallas as pl
from jax.experimental.pallas import tpu as pltpu


def lstm_head_kernel(x_ref, whh_ref, w1_ref, slab_ref, out_ref):
    # Static shapes from the refs.
    BB, O = out_ref.shape            # batch block, output size
    TB, I = x_ref.shape              # TB = T * BB
    T = TB // BB
    H = whh_ref.shape[0]
    F1 = w1_ref.shape[1]

    # ---- Unpack the (8, 128) constant slab (one DMA for 5 tiny tensors) ----
    slab = slab_ref[...]
    wih = slab[0:I, 0:4 * H]                     # (I, 4H)  gate order [i|f|g|o]
    b_g = slab[I:I + 1, 0:4 * H]                 # (1, 4H)  b_ih + b_hh
    b_1 = slab[I + 1:I + 2, 0:F1]                # (1, F1)
    w2t = slab[I + 2:I + 2 + O, 0:F1]            # (O, F1)  fc_2 weight, transposed
    b_2 = slab[I + 2 + O:I + 3 + O, 0:O]         # (1, O)

    whh = whh_ref[...]                           # (H, 4H), VMEM-resident across grid

    # ---- Input projection for all timesteps in one MXU pass ----------------
    # x rows are block-local, time-major: row t*BB + b  ->  (time t, batch b).
    xp_all = jnp.dot(x_ref[...], wih,
                     preferred_element_type=jnp.float32) + b_g      # (T*BB, 4H)

    # ---- Recurrence: fully unrolled, h/c carried in vregs ------------------
    h = jnp.zeros((BB, H), jnp.float32)
    c = jnp.zeros((BB, H), jnp.float32)
    for t in range(T):                           # T is small and static
        xp_t = xp_all[t * BB:(t + 1) * BB, :]    # sublane-aligned slice (BB, 4H)
        z = xp_t + jnp.dot(h, whh, preferred_element_type=jnp.float32)
        s = jax.nn.sigmoid(z)                    # one lane-dense EUP pass (i,f,o)
        g_g = jnp.tanh(z[:, 2 * H:3 * H])        # g gate
        i_g = s[:, 0 * H:1 * H]
        f_g = s[:, 1 * H:2 * H]
        o_g = s[:, 3 * H:4 * H]
        c = f_g * c + i_g * g_g
        h = o_g * jnp.tanh(c)

    # ---- Fused FC head on the final hidden state ----------------------------
    hn = jnp.maximum(h, 0.0)                                         # relu(hn)
    z1 = jnp.dot(hn, w1_ref[...], preferred_element_type=jnp.float32) + b_1
    z1 = jnp.maximum(z1, 0.0)                                        # relu(fc_1)
    # fc_2 as VPU multiply + lane reduction (avoids a dependent N=1 MXU pass).
    cols = [jnp.sum(z1 * w2t[j:j + 1, :], axis=-1, keepdims=True) + b_2[:, j:j + 1]
            for j in range(O)]
    out = cols[0] if O == 1 else jnp.concatenate(cols, axis=-1)
    out_ref[...] = out.astype(out_ref.dtype)


def pack_params(w_ih, b_gates, w_fc1, b_fc1, w_fc2, b_fc2):
    """Pack the tiny parameters into one (>=8, >=128) f32 slab.

    Done once at parameter-prep time, OUTSIDE the jitted hot path.
    Row layout: [0:I] w_ih | [I] b_gates | [I+1] b_fc1 | [I+2:I+2+O] w_fc2^T
                | [I+2+O] b_fc2 (first O lanes).
    """
    I, G = w_ih.shape                  # G = 4*H
    F1 = w_fc1.shape[1]
    O = w_fc2.shape[1]
    lane = max(G, F1, O, 128)
    lane = ((lane + 127) // 128) * 128
    rows = I + 3 + O
    rows_p = ((rows + 7) // 8) * 8
    slab = jnp.zeros((rows_p, lane), jnp.float32)
    slab = slab.at[0:I, 0:G].set(w_ih.astype(jnp.float32))
    slab = slab.at[I, 0:G].set(b_gates.reshape(G).astype(jnp.float32))
    slab = slab.at[I + 1, 0:F1].set(b_fc1.reshape(F1).astype(jnp.float32))
    slab = slab.at[I + 2:I + 2 + O, 0:F1].set(w_fc2.T.astype(jnp.float32))
    slab = slab.at[I + 2 + O, 0:O].set(b_fc2.reshape(O).astype(jnp.float32))
    return slab


@functools.partial(jax.jit, static_argnames=("out_size", "block_b"))
def lstm_forward(x, w_hh, w_fc1, slab, *, out_size, block_b=8):
    """x: (B, T, I) batch_first, like the PyTorch module."""
    B, T, I = x.shape
    H = w_hh.shape[0]
    F1 = w_fc1.shape[1]
    O = out_size

    # Pad batch to a multiple of the block size (padded rows are discarded).
    nb = pl.cdiv(B, block_b)
    Bp = nb * block_b
    if Bp != B:
        x = jnp.pad(x, ((0, Bp - B), (0, 0), (0, 0)))

    # Block-local, time-major layout: for batch block n, row t*BB + b.
    # (Tiny one-pass reshuffle; lets the kernel do the input projection as a
    #  single matmul and take sublane-aligned per-step slices.)
    x_arr = (x.astype(jnp.float32)
              .reshape(nb, block_b, T, I)
              .transpose(0, 2, 1, 3)
              .reshape(nb * T * block_b, I))

    vmem = pltpu.MemorySpace.VMEM
    out = pl.pallas_call(
        lstm_head_kernel,
        out_shape=jax.ShapeDtypeStruct((Bp, O), jnp.float32),
        grid=(nb,),
        in_specs=[
            pl.BlockSpec((T * block_b, I), lambda i: (i, 0),
                         memory_space=vmem),                    # x streams
            pl.BlockSpec((H, 4 * H), lambda i: (0, 0),
                         memory_space=vmem),                    # W_hh resident
            pl.BlockSpec((H, F1), lambda i: (0, 0),
                         memory_space=vmem),                    # W_fc1 resident
            pl.BlockSpec(slab.shape, lambda i: (0, 0),
                         memory_space=vmem),                    # packed consts
        ],
        out_specs=pl.BlockSpec((block_b, O), lambda i: (i, 0),
                               memory_space=vmem),
        compiler_params=pltpu.CompilerParams(
            dimension_semantics=("parallel",)),
    )(x_arr, w_hh, w_fc1, slab)
    return out[:B]


def ref_forward(x, w_ih, w_hh, b_gates, w_fc1, b_fc1, w_fc2, b_fc2):
    """Pure-JAX reference mirroring the PyTorch module semantics."""
    B, T, I = x.shape
    H = w_hh.shape[0]
    hp = jax.lax.Precision.HIGHEST
    h = jnp.zeros((B, H), jnp.float32)
    c = jnp.zeros((B, H), jnp.float32)
    for t in range(T):
        z = (jnp.dot(x[:, t, :], w_ih, precision=hp)
             + jnp.dot(h, w_hh, precision=hp) + b_gates)
        i = jax.nn.sigmoid(z[:, 0 * H:1 * H])
        f = jax.nn.sigmoid(z[:, 1 * H:2 * H])
        g = jnp.tanh(z[:, 2 * H:3 * H])
        o = jax.nn.sigmoid(z[:, 3 * H:4 * H])
        c = f * c + i * g
        h = o * jnp.tanh(c)
    hn = jnp.maximum(h, 0.0)                                         # relu(hn)
    z1 = jnp.maximum(jnp.dot(hn, w_fc1, precision=hp) + b_fc1, 0.0)  # relu(fc_1)
    return jnp.dot(z1, w_fc2, precision=hp) + b_fc2                  # fc_2


# TODO(synk): only the module's default config (num_layers=1, unidirectional)
# is implemented; multi-layer / bidirectional variants are not.

if __name__ == "__main__":
    # Module config: input_size=1, output_size=1, hidden_size=32,
    # num_layers=1, bidirectional=False.  Batch=16 sequences of length 8,
    # processed in blocks of 8 over a length-2 "parallel" grid.
    B, T, I, H, F1, O = 16, 8, 1, 32, 128, 1

    key = jax.random.PRNGKey(0)
    ks = jax.random.split(key, 9)

    def uniform(k, shape, bound):
        return jax.random.uniform(k, shape, jnp.float32, -bound, bound)

    k_lstm = H ** -0.5
    # Gate-concatenated layout, PyTorch gate order [i | f | g | o] along 4H,
    # already transposed so the kernel computes x @ W.
    w_ih = uniform(ks[0], (I, 4 * H), k_lstm)
    w_hh = uniform(ks[1], (H, 4 * H), k_lstm)
    b_ih = uniform(ks[2], (1, 4 * H), k_lstm)
    b_hh = uniform(ks[3], (1, 4 * H), k_lstm)
    b_gates = b_ih + b_hh

    k1 = H ** -0.5     # fc_1 fan_in = hidden_size * num_directions
    k2 = F1 ** -0.5    # fc_2 fan_in = 128
    w_fc1 = uniform(ks[4], (H, F1), k1)
    b_fc1 = uniform(ks[5], (1, F1), k1)
    w_fc2 = uniform(ks[6], (F1, O), k2)
    b_fc2 = uniform(ks[7], (1, O), k2)

    x = jax.random.normal(ks[8], (B, T, I), jnp.float32)

    # Parameter packing happens once, outside the jitted hot path.
    slab = pack_params(w_ih, b_gates, w_fc1, b_fc1, w_fc2, b_fc2)

    out = jax.block_until_ready(
        lstm_forward(x, w_hh, w_fc1, slab, out_size=O, block_b=8))

    ref = ref_forward(x, w_ih, w_hh, b_gates, w_fc1, b_fc1, w_fc2, b_fc2)
    assert out.shape == (B, O)
    assert jnp.allclose(out, ref, atol=1e-5, rtol=1e-4), (out, ref)

    print("KERNEL_OK")
</pallas_src>

<mosaic_0001>
module attributes {stable_mosaic.version = 11 : i64} {
  func.func @lstm_head_kernel(%arg0: i32, %arg1: memref<64x1xf32, #tpu.memory_space<vmem>>, %arg2: memref<32x128xf32, #tpu.memory_space<vmem>>, %arg3: memref<32x128xf32, #tpu.memory_space<vmem>>, %arg4: memref<8x128xf32, #tpu.memory_space<vmem>>, %arg5: memref<8x1xf32, #tpu.memory_space<vmem>>) attributes {dimension_semantics = [#tpu.dimension_semantics<parallel>], iteration_bounds = array<i64: 2>, scalar_prefetch = 0 : i64, scratch_operands = 0 : i64, tpu.core_type = #tpu.core_type<tc>, window_params = [{transform_indices = @transform_0, window_bounds = array<i64: 64, 1>}, {pipeline_mode = #tpu.pipeline_mode<synchronous>, transform_indices = @transform_1, window_bounds = array<i64: 32, 128>}, {pipeline_mode = #tpu.pipeline_mode<synchronous>, transform_indices = @transform_2, window_bounds = array<i64: 32, 128>}, {pipeline_mode = #tpu.pipeline_mode<synchronous>, transform_indices = @transform_3, window_bounds = array<i64: 8, 128>}, {transform_indices = @transform_4, window_bounds = array<i64: 8, 1>}]} {
    %c0 = arith.constant 0 : index
    %c0_0 = arith.constant 0 : index
    %0 = vector.load %arg4[%c0, %c0_0] : memref<8x128xf32, #tpu.memory_space<vmem>>, vector<8x128xf32>
    %1 = vector.extract_strided_slice %0 {offsets = [0, 0], sizes = [1, 128], strides = [1, 1]} : vector<8x128xf32> to vector<1x128xf32>
    %2 = vector.extract_strided_slice %0 {offsets = [1, 0], sizes = [1, 128], strides = [1, 1]} : vector<8x128xf32> to vector<1x128xf32>
    %3 = vector.extract_strided_slice %0 {offsets = [2, 0], sizes = [1, 128], strides = [1, 1]} : vector<8x128xf32> to vector<1x128xf32>
    %4 = vector.extract_strided_slice %0 {offsets = [3, 0], sizes = [1, 128], strides = [1, 1]} : vector<8x128xf32> to vector<1x128xf32>
    %5 = vector.extract_strided_slice %0 {offsets = [4, 0], sizes = [1, 1], strides = [1, 1]} : vector<8x128xf32> to vector<1x1xf32>
    %c0_1 = arith.constant 0 : index
    %c0_2 = arith.constant 0 : index
    %6 = vector.load %arg2[%c0_1, %c0_2] : memref<32x128xf32, #tpu.memory_space<vmem>>, vector<32x128xf32>
    %c0_3 = arith.constant 0 : index
    %c0_4 = arith.constant 0 : index
    %7 = vector.load %arg1[%c0_3, %c0_4] : memref<64x1xf32, #tpu.memory_space<vmem>>, vector<64x1xf32>
    %cst = arith.constant dense<0.000000e+00> : vector<64x128xf32>
    %8 = tpu.matmul %7, %1, %cst {dimension_numbers = #tpu.dot_dimension_numbers<[1], [0], [0], [1], [0, 0, 1, 1], [], []>} : vector<64x1xf32>, vector<1x128xf32>, vector<64x128xf32> -> vector<64x128xf32>
    %9 = vector.broadcast %2 : vector<1x128xf32> to vector<64x128xf32>
    %10 = arith.addf %8, %9 : vector<64x128xf32>
    %cst_5 = arith.constant 0.000000e+00 : f32
    %11 = vector.broadcast %cst_5 : f32 to vector<8x32xf32>
    %cst_6 = arith.constant 0.000000e+00 : f32
    %12 = vector.broadcast %cst_6 : f32 to vector<8x32xf32>
    %13 = vector.extract_strided_slice %10 {offsets = [0, 0], sizes = [8, 128], strides = [1, 1]} : vector<64x128xf32> to vector<8x128xf32>
    %cst_7 = arith.constant dense<0.000000e+00> : vector<8x128xf32>
    %14 = tpu.matmul %11, %6, %cst_7 {dimension_numbers = #tpu.dot_dimension_numbers<[1], [0], [0], [1], [0, 0, 1, 1], [], []>} : vector<8x32xf32>, vector<32x128xf32>, vector<8x128xf32> -> vector<8x128xf32>
    %15 = arith.addf %13, %14 : vector<8x128xf32>
    %16 = arith.negf %15 : vector<8x128xf32>
    %17 = math.exp %16 : vector<8x128xf32>
    %cst_8 = arith.constant 1.000000e+00 : f32
    %18 = vector.broadcast %cst_8 : f32 to vector<8x128xf32>
    %19 = arith.addf %18, %17 : vector<8x128xf32>
    %20 = arith.divf %18, %19 : vector<8x128xf32>
    %21 = vector.extract_strided_slice %15 {offsets = [0, 64], sizes = [8, 32], strides = [1, 1]} : vector<8x128xf32> to vector<8x32xf32>
    %22 = math.tanh %21 : vector<8x32xf32>
    %23 = vector.extract_strided_slice %20 {offsets = [0, 0], sizes = [8, 32], strides = [1, 1]} : vector<8x128xf32> to vector<8x32xf32>
    %24 = vector.extract_strided_slice %20 {offsets = [0, 32], sizes = [8, 32], strides = [1, 1]} : vector<8x128xf32> to vector<8x32xf32>
    %25 = vector.extract_strided_slice %20 {offsets = [0, 96], sizes = [8, 32], strides = [1, 1]} : vector<8x128xf32> to vector<8x32xf32>
    %26 = arith.mulf %24, %12 : vector<8x32xf32>
    %27 = arith.mulf %23, %22 : vector<8x32xf32>
    %28 = arith.addf %26, %27 : vector<8x32xf32>
    %29 = math.tanh %28 : vector<8x32xf32>
    %30 = arith.mulf %25, %29 : vector<8x32xf32>
    %31 = vector.extract_strided_slice %10 {offsets = [8, 0], sizes = [8, 128], strides = [1, 1]} : vector<64x128xf32> to vector<8x128xf32>
    %cst_9 = arith.constant dense<0.000000e+00> : vector<8x128xf32>
    %32 = tpu.matmul %30, %6, %cst_9 {dimension_numbers = #tpu.dot_dimension_numbers<[1], [0], [0], [1], [0, 0, 1, 1], [], []>} : vector<8x32xf32>, vector<32x128xf32>, vector<8x128xf32> -> vector<8x128xf32>
    %33 = arith.addf %31, %32 : vector<8x128xf32>
    %34 = arith.negf %33 : vector<8x128xf32>
    %35 = math.exp %34 : vector<8x128xf32>
    %cst_10 = arith.constant 1.000000e+00 : f32
    %36 = vector.broadcast %cst_10 : f32 to vector<8x128xf32>
    %37 = arith.addf %36, %35 : vector<8x128xf32>
    %38 = arith.divf %36, %37 : vector<8x128xf32>
    %39 = vector.extract_strided_slice %33 {offsets = [0, 64], sizes = [8, 32], strides = [1, 1]} : vector<8x128xf32> to vector<8x32xf32>
    %40 = math.tanh %39 : vector<8x32xf32>
    %41 = vector.extract_strided_slice %38 {offsets = [0, 0], sizes = [8, 32], strides = [1, 1]} : vector<8x128xf32> to vector<8x32xf32>
    %42 = vector.extract_strided_slice %38 {offsets = [0, 32], sizes = [8, 32], strides = [1, 1]} : vector<8x128xf32> to vector<8x32xf32>
    %43 = vector.extract_strided_slice %38 {offsets = [0, 96], sizes = [8, 32], strides = [1, 1]} : vector<8x128xf32> to vector<8x32xf32>
    %44 = arith.mulf %42, %28 : vector<8x32xf32>
    %45 = arith.mulf %41, %40 : vector<8x32xf32>
    %46 = arith.addf %44, %45 : vector<8x32xf32>
    %47 = math.tanh %46 : vector<8x32xf32>
    %48 = arith.mulf %43, %47 : vector<8x32xf32>
    %49 = vector.extract_strided_slice %10 {offsets = [16, 0], sizes = [8, 128], strides = [1, 1]} : vector<64x128xf32> to vector<8x128xf32>
    %cst_11 = arith.constant dense<0.000000e+00> : vector<8x128xf32>
    %50 = tpu.matmul %48, %6, %cst_11 {dimension_numbers = #tpu.dot_dimension_numbers<[1], [0], [0], [1], [0, 0, 1, 1], [], []>} : vector<8x32xf32>, vector<32x128xf32>, vector<8x128xf32> -> vector<8x128xf32>
    %51 = arith.addf %49, %50 : vector<8x128xf32>
    %52 = arith.negf %51 : vector<8x128xf32>
    %53 = math.exp %52 : vector<8x128xf32>
    %cst_12 = arith.constant 1.000000e+00 : f32
    %54 = vector.broadcast %cst_12 : f32 to vector<8x128xf32>
    %55 = arith.addf %54, %53 : vector<8x128xf32>
    %56 = arith.divf %54, %55 : vector<8x128xf32>
    %57 = vector.extract_strided_slice %51 {offsets = [0, 64], sizes = [8, 32], strides = [1, 1]} : vector<8x128xf32> to vector<8x32xf32>
    %58 = math.tanh %57 : vector<8x32xf32>
    %59 = vector.extract_strided_slice %56 {offsets = [0, 0], sizes = [8, 32], strides = [1, 1]} : vector<8x128xf32> to vector<8x32xf32>
    %60 = vector.extract_strided_slice %56 {offsets = [0, 32], sizes = [8, 32], strides = [1, 1]} : vector<8x128xf32> to vector<8x32xf32>
    %61 = vector.extract_strided_slice %56 {offsets = [0, 96], sizes = [8, 32], strides = [1, 1]} : vector<8x128xf32> to vector<8x32xf32>
    %62 = arith.mulf %60, %46 : vector<8x32xf32>
    %63 = arith.mulf %59, %58 : vector<8x32xf32>
    %64 = arith.addf %62, %63 : vector<8x32xf32>
    %65 = math.tanh %64 : vector<8x32xf32>
    %66 = arith.mulf %61, %65 : vector<8x32xf32>
    %67 = vector.extract_strided_slice %10 {offsets = [24, 0], sizes = [8, 128], strides = [1, 1]} : vector<64x128xf32> to vector<8x128xf32>
    %cst_13 = arith.constant dense<0.000000e+00> : vector<8x128xf32>
    %68 = tpu.matmul %66, %6, %cst_13 {dimension_numbers = #tpu.dot_dimension_numbers<[1], [0], [0], [1], [0, 0, 1, 1], [], []>} : vector<8x32xf32>, vector<32x128xf32>, vector<8x128xf32> -> vector<8x128xf32>
    %69 = arith.addf %67, %68 : vector<8x128xf32>
    %70 = arith.negf %69 : vector<8x128xf32>
    %71 = math.exp %70 : vector<8x128xf32>
    %cst_14 = arith.constant 1.000000e+00 : f32
    %72 = vector.broadcast %cst_14 : f32 to vector<8x128xf32>
    %73 = arith.addf %72, %71 : vector<8x128xf32>
    %74 = arith.divf %72, %73 : vector<8x128xf32>
    %75 = vector.extract_strided_slice %69 {offsets = [0, 64], sizes = [8, 32], strides = [1, 1]} : vector<8x128xf32> to vector<8x32xf32>
    %76 = math.tanh %75 : vector<8x32xf32>
    %77 = vector.extract_strided_slice %74 {offsets = [0, 0], sizes = [8, 32], strides = [1, 1]} : vector<8x128xf32> to vector<8x32xf32>
    %78 = vector.extract_strided_slice %74 {offsets = [0, 32], sizes = [8, 32], strides = [1, 1]} : vector<8x128xf32> to vector<8x32xf32>
    %79 = vector.extract_strided_slice %74 {offsets = [0, 96], sizes = [8, 32], strides = [1, 1]} : vector<8x128xf32> to vector<8x32xf32>
    %80 = arith.mulf %78, %64 : vector<8x32xf32>
    %81 = arith.mulf %77, %76 : vector<8x32xf32>
    %82 = arith.addf %80, %81 : vector<8x32xf32>
    %83 = math.tanh %82 : vector<8x32xf32>
    %84 = arith.mulf %79, %83 : vector<8x32xf32>
    %85 = vector.extract_strided_slice %10 {offsets = [32, 0], sizes = [8, 128], strides = [1, 1]} : vector<64x128xf32> to vector<8x128xf32>
    %cst_15 = arith.constant dense<0.000000e+00> : vector<8x128xf32>
    %86 = tpu.matmul %84, %6, %cst_15 {dimension_numbers = #tpu.dot_dimension_numbers<[1], [0], [0], [1], [0, 0, 1, 1], [], []>} : vector<8x32xf32>, vector<32x128xf32>, vector<8x128xf32> -> vector<8x128xf32>
    %87 = arith.addf %85, %86 : vector<8x128xf32>
    %88 = arith.negf %87 : vector<8x128xf32>
    %89 = math.exp %88 : vector<8x128xf32>
    %cst_16 = arith.constant 1.000000e+00 : f32
    %90 = vector.broadcast %cst_16 : f32 to vector<8x128xf32>
    %91 = arith.addf %90, %89 : vector<8x128xf32>
    %92 = arith.divf %90, %91 : vector<8x128xf32>
    %93 = vector.extract_strided_slice %87 {offsets = [0, 64], sizes = [8, 32], strides = [1, 1]} : vector<8x128xf32> to vector<8x32xf32>
    %94 = math.tanh %93 : vector<8x32xf32>
    %95 = vector.extract_strided_slice %92 {offsets = [0, 0], sizes = [8, 32], strides = [1, 1]} : vector<8x128xf32> to vector<8x32xf32>
    %96 = vector.extract_strided_slice %92 {offsets = [0, 32], sizes = [8, 32], strides = [1, 1]} : vector<8x128xf32> to vector<8x32xf32>
    %97 = vector.extract_strided_slice %92 {offsets = [0, 96], sizes = [8, 32], strides = [1, 1]} : vector<8x128xf32> to vector<8x32xf32>
    %98 = arith.mulf %96, %82 : vector<8x32xf32>
    %99 = arith.mulf %95, %94 : vector<8x32xf32>
    %100 = arith.addf %98, %99 : vector<8x32xf32>
    %101 = math.tanh %100 : vector<8x32xf32>
    %102 = arith.mulf %97, %101 : vector<8x32xf32>
    %103 = vector.extract_strided_slice %10 {offsets = [40, 0], sizes = [8, 128], strides = [1, 1]} : vector<64x128xf32> to vector<8x128xf32>
    %cst_17 = arith.constant dense<0.000000e+00> : vector<8x128xf32>
    %104 = tpu.matmul %102, %6, %cst_17 {dimension_numbers = #tpu.dot_dimension_numbers<[1], [0], [0], [1], [0, 0, 1, 1], [], []>} : vector<8x32xf32>, vector<32x128xf32>, vector<8x128xf32> -> vector<8x128xf32>
    %105 = arith.addf %103, %104 : vector<8x128xf32>
    %106 = arith.negf %105 : vector<8x128xf32>
    %107 = math.exp %106 : vector<8x128xf32>
    %cst_18 = arith.constant 1.000000e+00 : f32
    %108 = vector.broadcast %cst_18 : f32 to vector<8x128xf32>
    %109 = arith.addf %108, %107 : vector<8x128xf32>
    %110 = arith.divf %108, %109 : vector<8x128xf32>
    %111 = vector.extract_strided_slice %105 {offsets = [0, 64], sizes = [8, 32], strides = [1, 1]} : vector<8x128xf32> to vector<8x32xf32>
    %112 = math.tanh %111 : vector<8x32xf32>
    %113 = vector.extract_strided_slice %110 {offsets = [0, 0], sizes = [8, 32], strides = [1, 1]} : vector<8x128xf32> to vector<8x32xf32>
    %114 = vector.extract_strided_slice %110 {offsets = [0, 32], sizes = [8, 32], strides = [1, 1]} : vector<8x128xf32> to vector<8x32xf32>
    %115 = vector.extract_strided_slice %110 {offsets = [0, 96], sizes = [8, 32], strides = [1, 1]} : vector<8x128xf32> to vector<8x32xf32>
    %116 = arith.mulf %114, %100 : vector<8x32xf32>
    %117 = arith.mulf %113, %112 : vector<8x32xf32>
    %118 = arith.addf %116, %117 : vector<8x32xf32>
    %119 = math.tanh %118 : vector<8x32xf32>
    %120 = arith.mulf %115, %119 : vector<8x32xf32>
    %121 = vector.extract_strided_slice %10 {offsets = [48, 0], sizes = [8, 128], strides = [1, 1]} : vector<64x128xf32> to vector<8x128xf32>
    %cst_19 = arith.constant dense<0.000000e+00> : vector<8x128xf32>
    %122 = tpu.matmul %120, %6, %cst_19 {dimension_numbers = #tpu.dot_dimension_numbers<[1], [0], [0], [1], [0, 0, 1, 1], [], []>} : vector<8x32xf32>, vector<32x128xf32>, vector<8x128xf32> -> vector<8x128xf32>
    %123 = arith.addf %121, %122 : vector<8x128xf32>
    %124 = arith.negf %123 : vector<8x128xf32>
    %125 = math.exp %124 : vector<8x128xf32>
    %cst_20 = arith.constant 1.000000e+00 : f32
    %126 = vector.broadcast %cst_20 : f32 to vector<8x128xf32>
    %127 = arith.addf %126, %125 : vector<8x128xf32>
    %128 = arith.divf %126, %127 : vector<8x128xf32>
    %129 = vector.extract_strided_slice %123 {offsets = [0, 64], sizes = [8, 32], strides = [1, 1]} : vector<8x128xf32> to vector<8x32xf32>
    %130 = math.tanh %129 : vector<8x32xf32>
    %131 = vector.extract_strided_slice %128 {offsets = [0, 0], sizes = [8, 32], strides = [1, 1]} : vector<8x128xf32> to vector<8x32xf32>
    %132 = vector.extract_strided_slice %128 {offsets = [0, 32], sizes = [8, 32], strides = [1, 1]} : vector<8x128xf32> to vector<8x32xf32>
    %133 = vector.extract_strided_slice %128 {offsets = [0, 96], sizes = [8, 32], strides = [1, 1]} : vector<8x128xf32> to vector<8x32xf32>
    %134 = arith.mulf %132, %118 : vector<8x32xf32>
    %135 = arith.mulf %131, %130 : vector<8x32xf32>
    %136 = arith.addf %134, %135 : vector<8x32xf32>
    %137 = math.tanh %136 : vector<8x32xf32>
    %138 = arith.mulf %133, %137 : vector<8x32xf32>
    %139 = vector.extract_strided_slice %10 {offsets = [56, 0], sizes = [8, 128], strides = [1, 1]} : vector<64x128xf32> to vector<8x128xf32>
    %cst_21 = arith.constant dense<0.000000e+00> : vector<8x128xf32>
    %140 = tpu.matmul %138, %6, %cst_21 {dimension_numbers = #tpu.dot_dimension_numbers<[1], [0], [0], [1], [0, 0, 1, 1], [], []>} : vector<8x32xf32>, vector<32x128xf32>, vector<8x128xf32> -> vector<8x128xf32>
    %141 = arith.addf %139, %140 : vector<8x128xf32>
    %142 = arith.negf %141 : vector<8x128xf32>
    %143 = math.exp %142 : vector<8x128xf32>
    %cst_22 = arith.constant 1.000000e+00 : f32
    %144 = vector.broadcast %cst_22 : f32 to vector<8x128xf32>
    %145 = arith.addf %144, %143 : vector<8x128xf32>
    %146 = arith.divf %144, %145 : vector<8x128xf32>
    %147 = vector.extract_strided_slice %141 {offsets = [0, 64], sizes = [8, 32], strides = [1, 1]} : vector<8x128xf32> to vector<8x32xf32>
    %148 = math.tanh %147 : vector<8x32xf32>
    %149 = vector.extract_strided_slice %146 {offsets = [0, 0], sizes = [8, 32], strides = [1, 1]} : vector<8x128xf32> to vector<8x32xf32>
    %150 = vector.extract_strided_slice %146 {offsets = [0, 32], sizes = [8, 32], strides = [1, 1]} : vector<8x128xf32> to vector<8x32xf32>
    %151 = vector.extract_strided_slice %146 {offsets = [0, 96], sizes = [8, 32], strides = [1, 1]} : vector<8x128xf32> to vector<8x32xf32>
    %152 = arith.mulf %150, %136 : vector<8x32xf32>
    %153 = arith.mulf %149, %148 : vector<8x32xf32>
    %154 = arith.addf %152, %153 : vector<8x32xf32>
    %155 = math.tanh %154 : vector<8x32xf32>
    %156 = arith.mulf %151, %155 : vector<8x32xf32>
    %cst_23 = arith.constant 0.000000e+00 : f32
    %157 = vector.broadcast %cst_23 : f32 to vector<8x32xf32>
    %158 = arith.maximumf %156, %157 : vector<8x32xf32>
    %c0_24 = arith.constant 0 : index
    %c0_25 = arith.constant 0 : index
    %159 = vector.load %arg3[%c0_24, %c0_25] : memref<32x128xf32, #tpu.memory_space<vmem>>, vector<32x128xf32>
    %cst_26 = arith.constant dense<0.000000e+00> : vector<8x128xf32>
    %160 = tpu.matmul %158, %159, %cst_26 {dimension_numbers = #tpu.dot_dimension_numbers<[1], [0], [0], [1], [0, 0, 1, 1], [], []>} : vector<8x32xf32>, vector<32x128xf32>, vector<8x128xf32> -> vector<8x128xf32>
    %161 = vector.broadcast %3 : vector<1x128xf32> to vector<8x128xf32>
    %162 = arith.addf %160, %161 : vector<8x128xf32>
    %cst_27 = arith.constant 0.000000e+00 : f32
    %163 = vector.broadcast %cst_27 : f32 to vector<8x128xf32>
    %164 = arith.maximumf %162, %163 : vector<8x128xf32>
    %165 = vector.broadcast %4 : vector<1x128xf32> to vector<8x128xf32>
    %166 = arith.mulf %164, %165 : vector<8x128xf32>
    %cst_28 = arith.constant dense<0.000000e+00> : vector<8xf32>
    %167 = vector.multi_reduction <add>, %166, %cst_28 [1] : vector<8x128xf32> to vector<8xf32>
    %168 = vector.shape_cast %167 : vector<8xf32> to vector<8x1xf32>
    %169 = vector.broadcast %5 : vector<1x1xf32> to vector<8x1xf32>
    %170 = arith.addf %168, %169 : vector<8x1xf32>
    %c0_29 = arith.constant 0 : index
    %c0_30 = arith.constant 0 : index
    %171 = vector.load %arg5[%c0_29, %c0_30] : memref<8x1xf32, #tpu.memory_space<vmem>>, vector<8x1xf32>
    tpu.vector_store %arg5[%c0_29, %c0_30], %170 {strides = array<i32>} : memref<8x1xf32, #tpu.memory_space<vmem>>, vector<8x1xf32>,
    return
  }
  func.func @transform_0(%arg0: i32) -> (i32, i32) {
    %c0_i32 = arith.constant 0 : i32
    %c0_i32_0 = arith.constant 0 : i32
    return %arg0, %c0_i32 : i32, i32
  }
  func.func @transform_1(%arg0: i32) -> (i32, i32) {
    %c0_i32 = arith.constant 0 : i32
    %c0_i32_0 = arith.constant 0 : i32
    %c0_i32_1 = arith.constant 0 : i32
    return %c0_i32, %c0_i32_0 : i32, i32
  }
  func.func @transform_2(%arg0: i32) -> (i32, i32) {
    %c0_i32 = arith.constant 0 : i32
    %c0_i32_0 = arith.constant 0 : i32
    %c0_i32_1 = arith.constant 0 : i32
    return %c0_i32, %c0_i32_0 : i32, i32
  }
  func.func @transform_3(%arg0: i32) -> (i32, i32) {
    %c0_i32 = arith.constant 0 : i32
    %c0_i32_0 = arith.constant 0 : i32
    %c0_i32_1 = arith.constant 0 : i32
    return %c0_i32, %c0_i32_0 : i32, i32
  }
  func.func @transform_4(%arg0: i32) -> (i32, i32) {
    %c0_i32 = arith.constant 0 : i32
    %c0_i32_0 = arith.constant 0 : i32
    return %arg0, %c0_i32 : i32, i32
  }
}

</mosaic_0001>

<bundles_post_ra>
// kernel: lstm_forward.1
= control target key start
LH: loop header
LB: loop body
LE: loop exit
PB: predicated region body
PF: predicated region fallthrough
CT: control target
= control target key end

     0   :  { %s1614_s15 = smov 0   ;;  %s1853_s0 = inlined_call_operand.vmem [shape: f32[128,1], index: 0, kind: input, shape index: {}]   ;;  %s1854_s1 = inlined_call_operand.vmem [shape: f32[32,128], index: 1, kind: input, shape index: {}]   ;;  %s1855_s2 = inlined_call_operand.vmem [shape: f32[32,128], index: 2, kind: input, shape index: {}]   ;;  %s1856_s3 = inlined_call_operand.vmem [shape: f32[8,128], index: 3, kind: input, shape index: {}]   ;;  %s1857_s4 = inlined_call_operand.vmem [shape: f32[16,1], index: 4, kind: output, shape index: {}]  }
   0x1 LB: > { %s1620_s16 = sadd.s32 4294967295, %s1583_s15   ;;  %p1303_p0 = scmp.ge.s32.totalorder %s1583_s15, 1  ;;  %s1583_s15 = sphi %s1614_s15, %s14_s15  }
   0x2   : > { %p163_p1 = scmp.lt.s32.totalorder %s1583_s15, 3 }
   0x4   : > { %p164_p2 = pnand %p1303_p0, %p163_p1 }
   0x5   : > { %s1304_s21 = sshll.u32 (!%p164_p2), %s1620_s16, 3  ;;  %s1587_s6 = smov (!%p164_p2), 64  }
   0x6   : > { %167 = sbr.rel (%p164_p2) target bundleno = 5875 (0x16f3), region = 36  ;;  %p189_p3 = scmp.lt.s32.totalorder (!%p164_p2), %s1304_s21, 15 }
   0x7   : > { %s1588_s7 = smov (!%p164_p2), 32   ;;  %p194_p4 = scmp.lt.s32.totalorder (!%p164_p2), %s1620_s16, 1 }
   0xb   : > { %v1627_v0 = vld [vmem:[%s1854_s1 + $0x18] sm:$0xff]  ;;  %v1632_v1 = vld [vmem:[%s1856_s3] sm:$0xff]  ;;  %vm240_vm0 = vcmask 1040384   ;;  %v1585_v2 = vmov 0.0   ;;  %v1639_v3 = vld [vmem:[%s1854_s1 + $0x10] sm:$0xff]  ;;  %s1859_s21 = smov (!%p189_p3, %s1304_s21), 15  ;;  %v211_v8 = vlaneseq }
   0xc   : > { %1402 = vmatprep.subr.mxu1 %v1585_v2  ;;  %1388 = vmatprep.subr.msk.mxu0 %vm240_vm0, %v1632_v1  ;;  %v1648_v4 = vld [vmem:[%s1854_s1 + $0x8] sm:$0xff]  ;;  %vm1586_vm1 = vmmov 0   ;;  %s1305_s26 = sshll.u32 %s1859_s21, 3  ;;  %vm215_vm2 = vcmask 7168   ;;  %v1658_v5 = vld [vmem:[%s1854_s1] sm:$0xff]  ;;  %vm349_vm3 = vcmask 261120  }
   0xd   : > { %1403 = vmatpush3.msra.mxu1 %v1627_v0  ;;  %1389 = vmatpush3.msk.msra.mxu0 %vm240_vm0, %v1632_v1  ;;  %s1663_s5 = scalar_lea.vmem %s1853_s0, %s1305_s26  ;;  %v1692_v9 = vshrl.u32 %v211_v8, 7  ;;  %s1861_s16 = smov (!%p194_p4, %s1620_s16), 1 }
   0xe   : > { %1404 = vmatprep.subr.mxu1 %v1585_v2  ;;  %1410 = vmatprep.mubr.msk.f32.mxu1 %vm1586_vm1, %v1585_v2  ;;  %v203_v6 = vld [vmem:[%s1663_s5] sm:$0xff]  ;;  %v204_v7 = vld [vmem:[%s1663_s5 + $0x8] sm:$0xff]  ;;  %v205_v46 = vld [vmem:[%s1663_s5 + $0x10] sm:$0xff]  ;;  %s1306_s18 = sshll.u32 %s1861_s16, 3 }
   0xf   : > { %1405 = vmatpush3.msra.mxu1 %v1639_v3  ;;  %1424 = vmatprep.subr.mxu0 %v1585_v2  ;;  %v213_v10 = vsub.s32 1, %v1692_v9  ;;  %v206_v47 = vld [vmem:[%s1663_s5 + $0x18] sm:$0xff]  ;;  %v207_v48 = vld [vmem:[%s1663_s5 + $0x20] sm:$0xff]  ;;  %v208_v49 = vld [vmem:[%s1663_s5 + $0x28] sm:$0xff]  ;;  %s197_s21 = scalar_lea.vmem %s1857_s4, %s1306_s18 }
  0x10   : > { %1406 = vmatprep.subr.mxu1 %v1585_v2  ;;  %1390 = vmatprep.mubr.msk.f32.mxu0 %vm215_vm2, %v203_v6  ;;  %v209_v50 = vld [vmem:[%s1663_s5 + $0x30] sm:$0xff]  ;;  %v210_v51 = vld [vmem:[%s1663_s5 + $0x38] sm:$0xff] }
  0x11   : > { %1407 = vmatpush3.msra.mxu1 %v1648_v4  ;;  %1391 = vmatmul.mubr.msk.f32.vlgmr.msra.gmra.mxu0 %vm215_vm2, %v204_v7  ;;  %v1696_v13 = vrot.slane %v1632_v1, %v213_v10 }
  0x12   : > { %1408 = vmatprep.subr.mxu1 %v1585_v2  ;;  %1425 = vmatpush3.msra.mxu0 %v1627_v0 }
  0x13   : > { %1409 = vmatpush3.msra.mxu1 %v1658_v5  ;;  %1426 = vmatprep.subr.mxu0 %v1585_v2 }
  0x14   : > { %1411 = vmatmul.mubr.f32.vlgmr.msra.gmra.mxu1 %v1585_v2  ;;  %1413 = vmatprep.subr.mxu1 %v1585_v2 }
  0x15   : > { %1421 = vmatprep.mubr.msk.f32.mxu1 %vm1586_vm1, %v1585_v2  ;;  %1414 = vmatpush3.msra.mxu1 %v1627_v0 }
  0x16   : > { %1415 = vmatprep.subr.mxu1 %v1585_v2  ;;  %1427 = vmatpush3.msra.mxu0 %v1639_v3 }
  0x17   : > { %1416 = vmatpush3.msra.mxu1 %v1639_v3  ;;  %1428 = vmatprep.subr.mxu0 %v1585_v2 }
  0x18   : > { %1417 = vmatprep.subr.mxu1 %v1585_v2  ;;  %1429 = vmatpush3.msra.mxu0 %v1648_v4 }
  0x19   : > { %1418 = vmatpush3.msra.mxu1 %v1648_v4  ;;  %1430 = vmatprep.subr.mxu0 %v1585_v2 }
  0x1a   : > { %1419 = vmatprep.subr.mxu1 %v1585_v2  ;;  %1431 = vmatpush3.msra.mxu0 %v1658_v5 }
  0x1b   : > { %1420 = vmatpush3.msra.mxu1 %v1658_v5  ;;  %1446 = vmatprep.subr.mxu0 %v1585_v2 }
  0x1c   : > { %1435 = vmatprep.subr.mxu1 %v1585_v2  ;;  %1393 = vmatprep.mubr.msk.f32.mxu0 %vm215_vm2, %v205_v46 }
  0x1d   : > { %1394 = vmatmul.mubr.msk.f32.gmra.mxu0 %vm215_vm2, %v206_v47 }
  0x1e   : > { %1396 = vmatprep.mubr.msk.f32.mxu0 %vm215_vm2, %v207_v48 }
  0x21   : > { %1397 = vmatmul.mubr.msk.f32.gmra.mxu0 %vm215_vm2, %v208_v49 }
  0x22   : > { %1399 = vmatprep.mubr.msk.f32.mxu0 %vm215_vm2, %v209_v50 }
  0x25   : > { %1400 = vmatmul.mubr.msk.f32.gmra.mxu0 %vm215_vm2, %v210_v51 }
  0x26   : > { %1432 = vmatprep.mubr.msk.f32.mxu0 %vm1586_vm1, %v1585_v2 }
  0xd1   : > { %v1392_v11 = vpop.f32.mrf.mxu0 }
  0xd2   : > { %v316_v32 = vadd.f32 %v1392_v11, %v1696_v13 }
  0xd3   : > { %v310_v14 = vpop.f32.mrf.mxu0 }
  0xd4   : > { %v419_v12 = vpop.f32.mrf.mxu1  ;;  %v311_v16 = vadd.f32 %v310_v14, %v1696_v13 }
  0xd6   : > { %v1412_v15 = vpop.f32.mrf.mxu1  ;;  %v423_v17 = vadd.f32 %v419_v12, %v311_v16 }
  0xd8   : > { %1513 = vtanh.f32 %v423_v17  ;;  %v1316_v19 = vmul.f32 -1.442695, %v423_v17 }
  0xda   : > { %1515 = vpow2.f32 %v1316_v19 }
  0xdd   : > { %v1395_v56 = vpop.f32.mrf.mxu0 }
  0xdf   : > { %v320_v57 = vpop.f32.mrf.mxu0 }
  0xe0   : > { %v321_v62 = vadd.f32 %v320_v57, %v1696_v13 }
  0xe1   : > { %v1744_v58 = vpop.f32.mrf.mxu0 }
  0xe3   : > { %v1746_v59 = vpop.f32.mrf.mxu0 }
  0xe5   : > { %v1514_v18 = vpop.eup %1513  ;;  %v1748_v60 = vpop.f32.mrf.mxu0 }
  0xe6   : > { %433 = vrot.lane.b32.xlu0 %v1514_v18, %s1587_s6 }
  0xe7   : > { %v1516_v20 = vpop.eup %1515  ;;  %v1750_v61 = vpop.f32.mrf.mxu0 }
  0xe8   : > { %v427_v21 = vadd.f32 1.0, %v1516_v20 }
  0xea   : > { %1517 = vrcp.f32 %v427_v21 }
  0xf7   : > { %v1518_v22 = vpop.eup %1517 }
  0xf8   : > { %v431_v25 = vmul.f32 0.0, %v1518_v22 }
 0x158   : > { %v434_v23 = vpop.permute.xlu0 %433 }
 0x159   : > { %v436_v24 = vmul.f32 %v1518_v22, %v434_v23 }
 0x15b   : > { %438 = vrot.lane.b32.xlu0 %v436_v24, %s1588_s7  ;;  %v326_v24 = vadd.f32 %v1395_v56, %v1696_v13 }
 0x1cd   : > { %v439_v26 = vpop.permute.xlu0 %438 }
 0x1ce   : > { %v441_v27 = vadd.f32 %v439_v26, %v431_v25 }
 0x1d0   : > { %1519 = vtanh.f32 %v441_v27 }
 0x1dd   : > { %v1520_v28 = vpop.eup %1519 }
 0x1de   : > { %444 = vrot.lane.b32.xlu1 %v1520_v28, %s1587_s6 }
 0x250   : > { %v445_v29 = vpop.permute.xlu1 %444 }
 0x251   : > { %v447_v30 = vmul.f32 %v1518_v22, %v445_v29 }
 0x253   : > { %449 = vrot.lane.b32.xlu1 %v447_v30, %s1588_s7 }
 0x2c5   : > { %v450_v31 = vpop.permute.xlu1 %449 }
 0x2c6   : > { %1422 = vmatmul.mubr.msk.f32.vlgmr.msra.gmra.mxu1 %vm349_vm3, %v450_v31 }
 0x2c7   : > { %1436 = vmatpush3.msra.mxu1 %v1627_v0  ;;  %1443 = vmatprep.mubr.msk.f32.mxu1 %vm1586_vm1, %v1585_v2 }
 0x2c8   : > { %1437 = vmatprep.subr.mxu1 %v1585_v2 }
 0x2c9   : > { %1438 = vmatpush3.msra.mxu1 %v1639_v3 }
 0x2ca   : > { %1439 = vmatprep.subr.mxu1 %v1585_v2 }
 0x2cb   : > { %1440 = vmatpush3.msra.mxu1 %v1648_v4 }
 0x2cc   : > { %1441 = vmatprep.subr.mxu1 %v1585_v2 }
 0x2cd   : > { %1442 = vmatpush3.msra.mxu1 %v1658_v5 }
 0x2ce   : > { %1457 = vmatprep.subr.mxu1 %v1585_v2 }
 0x386   : > { %v519_v33 = vpop.f32.mrf.mxu1 }
 0x387   : > { %v523_v34 = vadd.f32 %v519_v33, %v316_v32 }
 0x388   : > { %v1423_v35 = vpop.f32.mrf.mxu1 }
 0x389   : > { %1521 = vtanh.f32 %v523_v34  ;;  %v1318_v37 = vmul.f32 -1.442695, %v523_v34 }
 0x38b   : > { %1523 = vpow2.f32 %v1318_v37 }
 0x396   : > { %v1522_v36 = vpop.eup %1521 }
 0x397   : > { %533 = vrot.lane.b32.xlu0 %v1522_v36, %s1587_s6 }
 0x398   : > { %v1524_v38 = vpop.eup %1523 }
 0x399   : > { %v527_v39 = vadd.f32 1.0, %v1524_v38 }
 0x39b   : > { %1525 = vrcp.f32 %v527_v39 }
 0x3a8   : > { %v1526_v40 = vpop.eup %1525 }
 0x3a9   : > { %v531_v43 = vmul.f32 %v1526_v40, %v441_v27 }
 0x409   : > { %v534_v41 = vpop.permute.xlu0 %533 }
 0x40a   : > { %v536_v42 = vmul.f32 %v1526_v40, %v534_v41 }
 0x40c   : > { %538 = vrot.lane.b32.xlu1 %v536_v42, %s1588_s7  ;;  %v331_v42 = vadd.f32 %v1746_v59, %v1696_v13 }
 0x47e   : > { %v539_v44 = vpop.permute.xlu1 %538 }
 0x47f   : > { %v541_v45 = vadd.f32 %v539_v44, %v531_v43 }
 0x481   : > { %1527 = vtanh.f32 %v541_v45 }
 0x48e   : > { %v1528_v52 = vpop.eup %1527 }
 0x48f   : > { %544 = vrot.lane.b32.xlu0 %v1528_v52, %s1587_s6 }
 0x501   : > { %v545_v53 = vpop.permute.xlu0 %544 }
 0x502   : > { %v547_v54 = vmul.f32 %v1526_v40, %v545_v53 }
 0x504   : > { %549 = vrot.lane.b32.xlu1 %v547_v54, %s1588_s7 }
 0x576   : > { %v550_v55 = vpop.permute.xlu1 %549 }
 0x577   : > { %1433 = vmatmul.mubr.msk.f32.vlgmr.msra.gmra.mxu0 %vm349_vm3, %v550_v55 }
 0x578   : > { %1447 = vmatpush3.msra.mxu0 %v1627_v0  ;;  %1454 = vmatprep.mubr.msk.f32.mxu0 %vm1586_vm1, %v1585_v2 }
 0x579   : > { %1448 = vmatprep.subr.mxu0 %v1585_v2 }
 0x57a   : > { %1449 = vmatpush3.msra.mxu0 %v1639_v3 }
 0x57b   : > { %1450 = vmatprep.subr.mxu0 %v1585_v2 }
 0x57c   : > { %1451 = vmatpush3.msra.mxu0 %v1648_v4 }
 0x57d   : > { %1452 = vmatprep.subr.mxu0 %v1585_v2 }
 0x57e   : > { %1453 = vmatpush3.msra.mxu0 %v1658_v5 }
 0x57f   : > { %1468 = vmatprep.subr.mxu0 %v1585_v2 }
 0x637   : > { %v619_v63 = vpop.f32.mrf.mxu0 }
 0x638   : > { %v623_v6 = vadd.f32 %v619_v63, %v321_v62  ;;  %v336_v63 = vadd.f32 %v1744_v58, %v1696_v13 }
 0x639   : > { %v1434_v7 = vpop.f32.mrf.mxu0 }
 0x63a   : > { %1529 = vtanh.f32 %v623_v6  ;;  %v1320_v10 = vmul.f32 -1.442695, %v623_v6 }
 0x63c   : > { %1531 = vpow2.f32 %v1320_v10 }
 0x647   : > { %v1530_v8 = vpop.eup %1529 }
 0x648   : > { %633 = vrot.lane.b32.xlu0 %v1530_v8, %s1587_s6 }
 0x649   : > { %v1532_v11 = vpop.eup %1531 }
 0x64a   : > { %v627_v12 = vadd.f32 1.0, %v1532_v11 }
 0x64c   : > { %1533 = vrcp.f32 %v627_v12 }
 0x659   : > { %v1534_v14 = vpop.eup %1533 }
 0x65a   : > { %v631_v17 = vmul.f32 %v1534_v14, %v541_v45 }
 0x6ba   : > { %v634_v15 = vpop.permute.xlu0 %633 }
 0x6bb   : > { %v636_v16 = vmul.f32 %v1534_v14, %v634_v15 }
 0x6bd   : > { %638 = vrot.lane.b32.xlu1 %v636_v16, %s1588_s7 }
 0x72f   : > { %v639_v18 = vpop.permute.xlu1 %638 }
 0x730   : > { %v641_v19 = vadd.f32 %v639_v18, %v631_v17 }
 0x732   : > { %1535 = vtanh.f32 %v641_v19 }
 0x73f   : > { %v1536_v20 = vpop.eup %1535 }
 0x740   : > { %644 = vrot.lane.b32.xlu0 %v1536_v20, %s1587_s6  ;;  %v341_v20 = vadd.f32 %v1750_v61, %v1696_v13 }
 0x7b2   : > { %v645_v21 = vpop.permute.xlu0 %644 }
 0x7b3   : > { %v647_v22 = vmul.f32 %v1534_v14, %v645_v21 }
 0x7b5   : > { %649 = vrot.lane.b32.xlu1 %v647_v22, %s1588_s7 }
 0x827   : > { %v650_v23 = vpop.permute.xlu1 %649 }
 0x828   : > { %1444 = vmatmul.mubr.msk.f32.vlgmr.msra.gmra.mxu1 %vm349_vm3, %v650_v23 }
 0x829   : > { %1458 = vmatpush3.msra.mxu1 %v1627_v0  ;;  %1465 = vmatprep.mubr.msk.f32.mxu1 %vm1586_vm1, %v1585_v2 }
 0x82a   : > { %1459 = vmatprep.subr.mxu1 %v1585_v2 }
 0x82b   : > { %1460 = vmatpush3.msra.mxu1 %v1639_v3 }
 0x82c   : > { %1461 = vmatprep.subr.mxu1 %v1585_v2 }
 0x82d   : > { %1462 = vmatpush3.msra.mxu1 %v1648_v4 }
 0x82e   : > { %1463 = vmatprep.subr.mxu1 %v1585_v2 }
 0x82f   : > { %1464 = vmatpush3.msra.mxu1 %v1658_v5 }
 0x830   : > { %1479 = vmatprep.subr.mxu1 %v1585_v2 }
 0x8e8   : > { %v719_v25 = vpop.f32.mrf.mxu1 }
 0x8e9   : > { %v723_v26 = vadd.f32 %v719_v25, %v326_v24 }
 0x8ea   : > { %v1445_v27 = vpop.f32.mrf.mxu1 }
 0x8eb   : > { %1537 = vtanh.f32 %v723_v26  ;;  %v1322_v29 = vmul.f32 -1.442695, %v723_v26 }
 0x8ed   : > { %1539 = vpow2.f32 %v1322_v29 }
 0x8f8   : > { %v1538_v28 = vpop.eup %1537 }
 0x8f9   : > { %733 = vrot.lane.b32.xlu0 %v1538_v28, %s1587_s6 }
 0x8fa   : > { %v1540_v30 = vpop.eup %1539 }
 0x8fb   : > { %v727_v31 = vadd.f32 1.0, %v1540_v30 }
 0x8fd   : > { %1541 = vrcp.f32 %v727_v31 }
 0x90a   : > { %v1542_v32 = vpop.eup %1541 }
 0x90b   : > { %v731_v35 = vmul.f32 %v1542_v32, %v641_v19 }
 0x96b   : > { %v734_v33 = vpop.permute.xlu0 %733 }
 0x96c   : > { %v736_v34 = vmul.f32 %v1542_v32, %v734_v33 }
 0x96e   : > { %738 = vrot.lane.b32.xlu1 %v736_v34, %s1588_s7 }
 0x9e0   : > { %v739_v36 = vpop.permute.xlu1 %738 }
 0x9e1   : > { %v741_v37 = vadd.f32 %v739_v36, %v731_v35 }
 0x9e3   : > { %1543 = vtanh.f32 %v741_v37 }
 0x9f0   : > { %v1544_v38 = vpop.eup %1543 }
 0x9f1   : > { %744 = vrot.lane.b32.xlu0 %v1544_v38, %s1587_s6 }
 0xa63   : > { %v745_v39 = vpop.permute.xlu0 %744 }
 0xa64   : > { %v747_v40 = vmul.f32 %v1542_v32, %v745_v39 }
 0xa66   : > { %749 = vrot.lane.b32.xlu1 %v747_v40, %s1588_s7 }
 0xad8   : > { %v750_v41 = vpop.permute.xlu1 %749 }
 0xad9   : > { %1455 = vmatmul.mubr.msk.f32.vlgmr.msra.gmra.mxu0 %vm349_vm3, %v750_v41 }
 0xada   : > { %1469 = vmatpush3.msra.mxu0 %v1627_v0  ;;  %1476 = vmatprep.mubr.msk.f32.mxu0 %vm1586_vm1, %v1585_v2 }
 0xadb   : > { %1470 = vmatprep.subr.mxu0 %v1585_v2 }
 0xadc   : > { %1471 = vmatpush3.msra.mxu0 %v1639_v3 }
 0xadd   : > { %1472 = vmatprep.subr.mxu0 %v1585_v2 }
 0xade   : > { %1473 = vmatpush3.msra.mxu0 %v1648_v4 }
 0xadf   : > { %1474 = vmatprep.subr.mxu0 %v1585_v2 }
 0xae0   : > { %1475 = vmatpush3.msra.mxu0 %v1658_v5 }
 0xae1   : > { %1490 = vmatprep.subr.mxu0 %v1585_v2 }
 0xb99   : > { %v819_v43 = vpop.f32.mrf.mxu0 }
 0xb9a   : > { %v823_v44 = vadd.f32 %v819_v43, %v331_v42 }
 0xb9b   : > { %v1456_v45 = vpop.f32.mrf.mxu0 }
 0xb9c   : > { %1545 = vtanh.f32 %v823_v44  ;;  %v1324_v47 = vmul.f32 -1.442695, %v823_v44 }
 0xb9e   : > { %1547 = vpow2.f32 %v1324_v47 }
 0xba9   : > { %v1546_v46 = vpop.eup %1545 }
 0xbaa   : > { %833 = vrot.lane.b32.xlu0 %v1546_v46, %s1587_s6 }
 0xbab   : > { %v1548_v48 = vpop.eup %1547 }
 0xbac   : > { %v827_v49 = vadd.f32 1.0, %v1548_v48 }
 0xbae   : > { %1549 = vrcp.f32 %v827_v49 }
 0xbbb   : > { %v1550_v50 = vpop.eup %1549 }
 0xbbc   : > { %v831_v53 = vmul.f32 %v1550_v50, %v741_v37  ;;  %v346_v37 = vadd.f32 %v1748_v60, %v1696_v13  ;;  %v1152_v60 = vld [vmem:[%s1855_s2 + $0x18] sm:$0xff] }
 0xc1c   : > { %v834_v51 = vpop.permute.xlu0 %833 }
 0xc1d   : > { %v836_v52 = vmul.f32 %v1550_v50, %v834_v51  ;;  %v1150_v51 = vld [vmem:[%s1855_s2 + $0x8] sm:$0xff] }
 0xc1f   : > { %838 = vrot.lane.b32.xlu1 %v836_v52, %s1588_s7  ;;  %v1149_v52 = vld [vmem:[%s1855_s2] sm:$0xff] }
 0xc91   : > { %v839_v54 = vpop.permute.xlu1 %838 }
 0xc92   : > { %v841_v55 = vadd.f32 %v839_v54, %v831_v53 }
 0xc94   : > { %1551 = vtanh.f32 %v841_v55 }
 0xca1   : > { %v1552_v56 = vpop.eup %1551 }
 0xca2   : > { %844 = vrot.lane.b32.xlu0 %v1552_v56, %s1587_s6 }
 0xd14   : > { %v845_v57 = vpop.permute.xlu0 %844 }
 0xd15   : > { %v847_v59 = vmul.f32 %v1550_v50, %v845_v57  ;;  %v1151_v50 = vld [vmem:[%s1855_s2 + $0x10] sm:$0xff] }
 0xd17   : > { %849 = vrot.lane.b32.xlu1 %v847_v59, %s1588_s7  ;;  %v1155_v59 = vsub.s32 2, %v1692_v9 }
 0xd89   : > { %v850_v62 = vpop.permute.xlu1 %849 }
 0xd8a   : > { %1466 = vmatmul.mubr.msk.f32.vlgmr.msra.gmra.mxu1 %vm349_vm3, %v850_v62  ;;  %v1156_v62 = vrot.slane %v1632_v1, %v1155_v59 }
 0xd8b   : > { %1480 = vmatpush3.msra.mxu1 %v1627_v0  ;;  %1487 = vmatprep.mubr.msk.f32.mxu1 %vm1586_vm1, %v1585_v2 }
 0xd8c   : > { %1481 = vmatprep.subr.mxu1 %v1585_v2 }
 0xd8d   : > { %1482 = vmatpush3.msra.mxu1 %v1639_v3 }
 0xd8e   : > { %1483 = vmatprep.subr.mxu1 %v1585_v2 }
 0xd8f   : > { %1484 = vmatpush3.msra.mxu1 %v1648_v4 }
 0xd90   : > { %1485 = vmatprep.subr.mxu1 %v1585_v2 }
 0xd91   : > { %1486 = vmatpush3.msra.mxu1 %v1658_v5 }
 0xe4a   : > { %v919_v6 = vpop.f32.mrf.mxu1 }
 0xe4b   : > { %v923_v0 = vadd.f32 %v919_v6, %v336_v63 }
 0xe4c   : > { %v1467_v7 = vpop.f32.mrf.mxu1 }
 0xe4d   : > { %1553 = vtanh.f32 %v923_v0  ;;  %v1326_v10 = vmul.f32 -1.442695, %v923_v0 }
 0xe4f   : > { %1555 = vpow2.f32 %v1326_v10 }
 0xe5a   : > { %v1554_v8 = vpop.eup %1553 }
 0xe5b   : > { %933 = vrot.lane.b32.xlu0 %v1554_v8, %s1587_s6 }
 0xe5c   : > { %v1556_v3 = vpop.eup %1555 }
 0xe5d   : > { %v927_v11 = vadd.f32 1.0, %v1556_v3  ;;  %v1242_v3 = vsub.s32 4, %v1692_v9 }
 0xe5f   : > { %1557 = vrcp.f32 %v927_v11  ;;  %v1243_v11 = vrot.slane %v1632_v1, %v1242_v3 }
 0xe6c   : > { %v1558_v4 = vpop.eup %1557 }
 0xe6d   : > { %v931_v5 = vmul.f32 %v1558_v4, %v841_v55 }
 0xecd   : > { %v934_v12 = vpop.permute.xlu0 %933 }
 0xece   : > { %v936_v14 = vmul.f32 %v1558_v4, %v934_v12 }
 0xed0   : > { %938 = vrot.lane.b32.xlu1 %v936_v14, %s1588_s7 }
 0xf42   : > { %v939_v15 = vpop.permute.xlu1 %938 }
 0xf43   : > { %v941_v58 = vadd.f32 %v939_v15, %v931_v5 }
 0xf45   : > { %1559 = vtanh.f32 %v941_v58 }
 0xf52   : > { %v1560_v16 = vpop.eup %1559 }
 0xf53   : > { %944 = vrot.lane.b32.xlu0 %v1560_v16, %s1587_s6 }
 0xfc5   : > { %v945_v17 = vpop.permute.xlu0 %944 }
 0xfc6   : > { %v947_v18 = vmul.f32 %v1558_v4, %v945_v17 }
 0xfc8   : > { %949 = vrot.lane.b32.xlu1 %v947_v18, %s1588_s7 }
0x103a   : > { %v950_v19 = vpop.permute.xlu1 %949 }
0x103b   : > { %1477 = vmatmul.mubr.msk.f32.vlgmr.msra.gmra.mxu0 %vm349_vm3, %v950_v19 }
0x103c   : > { %1498 = vmatprep.mubr.msk.f32.mxu0 %vm1586_vm1, %v1585_v2  ;;  %1491 = vmatpush3.msra.mxu0 %v1152_v60 }
0x103d   : > { %1492 = vmatprep.subr.mxu0 %v1585_v2 }
0x103e   : > { %1493 = vmatpush3.msra.mxu0 %v1151_v50 }
0x103f   : > { %1494 = vmatprep.subr.mxu0 %v1585_v2 }
0x1040   : > { %1495 = vmatpush3.msra.mxu0 %v1150_v51 }
0x1041   : > { %1496 = vmatprep.subr.mxu0 %v1585_v2  ;;  %v1235_v2 = vsub.s32 3, %v1692_v9 }
0x1042   : > { %1497 = vmatpush3.msra.mxu0 %v1149_v52 }
0x1043   : > { %v1236_v0 = vrot.slane %v1632_v1, %v1235_v2 }
0x10fb   : > { %v1019_v21 = vpop.f32.mrf.mxu0 }
0x10fc   : > { %v1023_v22 = vadd.f32 %v1019_v21, %v341_v20 }
0x10fd   : > { %v1478_v23 = vpop.f32.mrf.mxu0 }
0x10fe   : > { %1561 = vtanh.f32 %v1023_v22  ;;  %v1328_v25 = vmul.f32 -1.442695, %v1023_v22 }
0x1100   : > { %1563 = vpow2.f32 %v1328_v25 }
0x110b   : > { %v1562_v24 = vpop.eup %1561 }
0x110c   : > { %1033 = vrot.lane.b32.xlu0 %v1562_v24, %s1587_s6 }
0x110d   : > { %v1564_v26 = vpop.eup %1563 }
0x110e   : > { %v1027_v27 = vadd.f32 1.0, %v1564_v26 }
0x1110   : > { %1565 = vrcp.f32 %v1027_v27 }
0x111d   : > { %v1566_v28 = vpop.eup %1565 }
0x111e   : > { %v1031_v31 = vmul.f32 %v1566_v28, %v941_v58 }
0x117e   : > { %v1034_v29 = vpop.permute.xlu0 %1033 }
0x117f   : > { %v1036_v30 = vmul.f32 %v1566_v28, %v1034_v29 }
0x1181   : > { %1038 = vrot.lane.b32.xlu1 %v1036_v30, %s1588_s7 }
0x11f3   : > { %v1039_v32 = vpop.permute.xlu1 %1038 }
0x11f4   : > { %v1041_v61 = vadd.f32 %v1039_v32, %v1031_v31 }
0x11f6   : > { %1567 = vtanh.f32 %v1041_v61 }
0x1203   : > { %v1568_v33 = vpop.eup %1567 }
0x1204   : > { %1044 = vrot.lane.b32.xlu0 %v1568_v33, %s1587_s6 }
0x1276   : > { %v1045_v34 = vpop.permute.xlu0 %1044 }
0x1277   : > { %v1047_v35 = vmul.f32 %v1566_v28, %v1045_v34 }
0x1279   : > { %1049 = vrot.lane.b32.xlu1 %v1047_v35, %s1588_s7 }
0x12eb   : > { %v1050_v36 = vpop.permute.xlu1 %1049 }
0x12ec   : > { %1488 = vmatmul.mubr.msk.f32.vlgmr.msra.gmra.mxu1 %vm349_vm3, %v1050_v36 }
0x13ac   : > { %v1119_v38 = vpop.f32.mrf.mxu1 }
0x13ad   : > { %v1123_v39 = vadd.f32 %v1119_v38, %v346_v37 }
0x13ae   : > { %v1489_v40 = vpop.f32.mrf.mxu1 }
0x13af   : > { %1569 = vtanh.f32 %v1123_v39  ;;  %v1330_v42 = vmul.f32 -1.442695, %v1123_v39 }
0x13b1   : > { %1571 = vpow2.f32 %v1330_v42 }
0x13bc   : > { %v1570_v41 = vpop.eup %1569 }
0x13bd   : > { %1133 = vrot.lane.b32.xlu0 %v1570_v41, %s1587_s6 }
0x13be   : > { %v1572_v43 = vpop.eup %1571 }
0x13bf   : > { %v1127_v44 = vadd.f32 1.0, %v1572_v43 }
0x13c1   : > { %1573 = vrcp.f32 %v1127_v44 }
0x13ce   : > { %v1574_v45 = vpop.eup %1573 }
0x13cf   : > { %v1131_v48 = vmul.f32 %v1574_v45, %v1041_v61 }
0x142f   : > { %v1134_v46 = vpop.permute.xlu0 %1133 }
0x1430   : > { %v1136_v47 = vmul.f32 %v1574_v45, %v1134_v46 }
0x1432   : > { %1138 = vrot.lane.b32.xlu1 %v1136_v47, %s1588_s7 }
0x14a4   : > { %v1139_v49 = vpop.permute.xlu1 %1138 }
0x14a5   : > { %v1141_v13 = vadd.f32 %v1139_v49, %v1131_v48 }
0x14a7   : > { %1575 = vtanh.f32 %v1141_v13 }
0x14b4   : > { %v1576_v53 = vpop.eup %1575 }
0x14b5   : > { %1144 = vrot.lane.b32.xlu0 %v1576_v53, %s1587_s6 }
0x1527   : > { %v1145_v54 = vpop.permute.xlu0 %1144 }
0x1528   : > { %v1147_v55 = vmul.f32 %v1574_v45, %v1145_v54 }
0x152a   : > { %v1148_v56 = vmax.f32 %v1147_v55, 0.0 }
0x152c   : > { %1158 = vrot.lane.b32.xlu1 %v1148_v56, %s1588_s7 }
0x159e   : > { %v1159_v57 = vpop.permute.xlu1 %1158 }
0x159f   : > { %1499 = vmatmul.mubr.msk.f32.vlgmr.msra.gmra.mxu0 %vm349_vm3, %v1159_v57 }
0x165f   : > { %v1228_v63 = vpop.f32.mrf.mxu0 }
0x1660   : > { %v1229_v6 = vadd.f32 %v1228_v63, %v1156_v62 }
0x1661   : > { %v1500_v7 = vpop.f32.mrf.mxu0 }
0x1662   : > { %v1232_v8 = vmax.f32 %v1229_v6, 0.0 }
0x1664   : > { %v1237_v10 = vmul.f32 %v1236_v0, %v1232_v8 }
0x1666   : > { %1238 = vadd.xlane.f32.xlu0 %v1237_v10 }
0x16ef   : > { %v1239_v4 = vpop.xlane.xlu0 %1238 }
0x16f0   : > { %v1244_v12 = vadd.f32 %v1243_v11, %v1239_v4 }
0x16f2   : > { %1245 = vst.msk [vmem:[%s197_s21] sm:$0xff] %vm215_vm2, %v1244_v12 }
0x16f3 PF: > { %s14_s15 = sadd.s32 1, %s1583_s15  }
0x16f4   : > { %p11_p5 = scmp.ge.s32.totalorder %s14_s15, 4  }
0x16f6   :  { %13 = sbr.rel (!%p11_p5) target bundleno = 1 (0x1), region = 66 }

</bundles_post_ra>
